<compile_context>
chip_gen: v7x
topology: tpu7x:2x2x1
jax: 0.10.0
libtpu: 0.0.40
codegen_flags: <defaults>
</compile_context>

<pallas_src>
import jax
import jax.numpy as jnp
from jax.experimental import pallas as pl
from jax.experimental.pallas import tpu as pltpu

_LANE = 128
_SPLIT_THRESHOLD = 128  # per-branch width above which block-diagonal packing is dropped


def _round_up(x: int, m: int) -> int:
    return ((x + m - 1) // m) * m


# ---------------------------------------------------------------------------
# Kernels
# ---------------------------------------------------------------------------
def _make_packed_kernel(num_layers: int):
    """Block-diagonal packed chain: refs = (z, w0, b0, ..., w{L-1}, b{L-1}, out)."""

    def kernel(*refs):
        x_ref, out_ref = refs[0], refs[-1]
        h = x_ref[...].astype(jnp.float32)
        for layer in range(num_layers):
            w = refs[1 + 2 * layer][...]
            b = refs[2 + 2 * layer][...]
            h = jnp.dot(h.astype(w.dtype), w, preferred_element_type=jnp.float32) + b
            if layer < num_layers - 1:  # ReLU on all but the final Linear
                h = jnp.maximum(h, 0.0)
        out_ref[...] = h.astype(out_ref.dtype)

    return kernel


def _make_split_kernel(num_layers: int, q0: int):
    """Split chain (no block-diagonal zeros):
    refs = (z, w0_packed, b0_packed, wg1, bg1, wb1, bb1, ..., out).
    q0 = padded per-branch width after layer 0 (multiple of 128), so the gamma/beta
    activation slices and the two output stores are lane-aligned and lane-dense.
    """
    assert num_layers >= 2

    def kernel(*refs):
        x_ref, out_ref = refs[0], refs[-1]
        w0 = refs[1][...]
        b0 = refs[2][...]
        h = jnp.dot(x_ref[...].astype(w0.dtype), w0,
                    preferred_element_type=jnp.float32) + b0
        h = jnp.maximum(h, 0.0)
        hg = h[:, :q0]
        hb = h[:, q0:]
        idx = 3
        for layer in range(1, num_layers):
            wg, bg = refs[idx][...], refs[idx + 1][...]
            wb, bb = refs[idx + 2][...], refs[idx + 3][...]
            idx += 4
            hg = jnp.dot(hg.astype(wg.dtype), wg, preferred_element_type=jnp.float32) + bg
            hb = jnp.dot(hb.astype(wb.dtype), wb, preferred_element_type=jnp.float32) + bb
            if layer < num_layers - 1:
                hg = jnp.maximum(hg, 0.0)
                hb = jnp.maximum(hb, 0.0)
        q_last = hg.shape[1]
        out_ref[:, :q_last] = hg.astype(out_ref.dtype)
        out_ref[:, q_last:] = hb.astype(out_ref.dtype)

    return kernel


# ---------------------------------------------------------------------------
# Parameter packing
# ---------------------------------------------------------------------------
def _pack_blockdiag(gamma_params, beta_params, weight_dtype=jnp.float32):
    """Small-dim regime: layer-0 weights concatenated along the output dim, later layers
    block-diagonal; every packed output width zero-padded to a multiple of 128 lanes."""
    (gw, gb), (bw, bb) = gamma_params, beta_params
    packed = []
    prev_pad = gw[0].shape[0]
    out_pad = _LANE
    for i in range(len(gw)):
        din, dout = gw[i].shape
        out_pad = _round_up(2 * dout, _LANE)
        if i == 0:
            w = jnp.zeros((din, out_pad), jnp.float32)
            w = w.at[:, :dout].set(gw[i])
            w = w.at[:, dout:2 * dout].set(bw[i])
        else:
            w = jnp.zeros((prev_pad, out_pad), jnp.float32)
            w = w.at[:din, :dout].set(gw[i])
            w = w.at[din:2 * din, dout:2 * dout].set(bw[i])
        b = jnp.zeros((1, out_pad), jnp.float32)
        b = b.at[:, :dout].set(gb[i])
        b = b.at[:, dout:2 * dout].set(bb[i])
        packed += [w.astype(weight_dtype), b]
        prev_pad = out_pad
    return packed, out_pad  # operands [w0,b0,w1,b1,...], final packed output width


def _pack_split(gamma_params, beta_params, weight_dtype=jnp.float32):
    """Large-dim regime: layer-0 concatenated (both branches read z), later layers kept
    as separate dense per-branch weights; each branch padded to a multiple of 128."""
    (gw, gb), (bw, bb) = gamma_params, beta_params
    n = len(gw)
    q = [_round_up(w.shape[1], _LANE) for w in gw]
    cond, d0 = gw[0].shape
    w0 = jnp.zeros((cond, 2 * q[0]), jnp.float32)
    w0 = w0.at[:, :d0].set(gw[0])
    w0 = w0.at[:, q[0]:q[0] + d0].set(bw[0])
    b0 = jnp.zeros((1, 2 * q[0]), jnp.float32)
    b0 = b0.at[:, :d0].set(gb[0])
    b0 = b0.at[:, q[0]:q[0] + d0].set(bb[0])
    packed = [w0.astype(weight_dtype), b0]
    for i in range(1, n):
        din, dout = gw[i].shape
        qin, qout = q[i - 1], q[i]
        for wt, bt in ((gw[i], gb[i]), (bw[i], bb[i])):
            w = jnp.zeros((qin, qout), jnp.float32).at[:din, :dout].set(wt)
            b = jnp.zeros((1, qout), jnp.float32).at[:, :dout].set(bt)
            packed += [w.astype(weight_dtype), b]
    return packed, q


# ---------------------------------------------------------------------------
# pallas_call wrapper
# ---------------------------------------------------------------------------
def _pick_block_batch(batch: int, min_batch: int = 512, max_block: int = 1024):
    """Batch tile for the parallel-grid path: >= 2 blocks (keeps both v7x TensorCores
    busy), <= 1024 rows (amortizes the ~0.35us/step overhead on single-TC v5e/v6e)."""
    if batch < min_batch:
        return None
    bb = max_block
    while bb >= 8:
        if batch % bb == 0 and batch // bb >= 2:
            return bb
        bb //= 2
    return None


def fused_film_forward(z, param_operands, kernel, out_width, *, cost_estimate):
    batch, cond_dim = z.shape
    out_shape = jax.ShapeDtypeStruct((batch, out_width), z.dtype)
    whole_vmem = pl.BlockSpec(memory_space=pltpu.MemorySpace.VMEM)
    operands = [z] + list(param_operands)
    param_bytes = sum(int(p.size) * p.dtype.itemsize for p in param_operands)
    # TODO(synk): add a K-tiled "arbitrary" grid axis + f32 VMEM accumulator for configs
    # whose packed weights exceed the v7x 64 MiB VMEM budget; the current code assumes
    # the packed weights are fully VMEM-resident.

    bb = _pick_block_batch(batch)
    if bb is not None:
        # Batch-tiled parallel grid; weights/biases are single-buffered VMEM residents.
        io_bytes = 2 * bb * (cond_dim + out_width) * z.dtype.itemsize  # double-buffered z/out
        est = param_bytes + io_bytes + (2 << 20)
        cp_kwargs = dict(dimension_semantics=("parallel",))
        if est > (24 << 20):
            cp_kwargs["vmem_limit_bytes"] = min(int(est * 1.25), 100 << 20)
        return pl.pallas_call(
            kernel,
            out_shape=out_shape,
            grid=(batch // bb,),
            in_specs=[pl.BlockSpec((bb, cond_dim), lambda i: (i, 0))]
                     + [whole_vmem] * len(param_operands),
            out_specs=pl.BlockSpec((bb, out_width), lambda i: (i, 0)),
            compiler_params=pltpu.CompilerParams(**cp_kwargs),
            cost_estimate=cost_estimate,
        )(*operands)

    # Small-batch path: single invocation, everything resident in VMEM, no grid.
    est = param_bytes + batch * (cond_dim + out_width) * z.dtype.itemsize + (2 << 20)
    cp = None
    if est > (24 << 20):
        cp = pltpu.CompilerParams(vmem_limit_bytes=min(int(est * 1.25), 100 << 20))
    return pl.pallas_call(
        kernel,
        out_shape=out_shape,
        in_specs=[whole_vmem] * len(operands),
        out_specs=whole_vmem,
        compiler_params=cp,
        cost_estimate=cost_estimate,
    )(*operands)


# ---------------------------------------------------------------------------
# Module
# ---------------------------------------------------------------------------
class NonLinearFiLMGeneratorPallas:
    """JAX/Pallas port of NonLinearFiLMGenerator: gamma/beta MLPs fused into one kernel."""

    def __init__(self, conditioning_dim, feature_dim, intermediate_dim, key,
                 param_dtype=jnp.float32):
        if isinstance(intermediate_dim, int):
            intermediate_dim = [intermediate_dim]
        assert intermediate_dim, "intermediate_dim must contain at least one width"
        self.conditioning_dim = int(conditioning_dim)
        self.feature_dim = int(feature_dim)
        self.dims = [int(d) for d in intermediate_dim]

        k_gamma, k_beta = jax.random.split(key)
        self.gamma_params = self._init_mlp(conditioning_dim, self.dims, feature_dim, k_gamma)
        self.beta_params = self._init_mlp(conditioning_dim, self.dims, feature_dim, k_beta)

        num_layers = len(self.dims) + 1
        branch_widths = self.dims + [self.feature_dim]
        self._use_split = max(branch_widths) > _SPLIT_THRESHOLD
        if self._use_split:
            self._operands, q = _pack_split(self.gamma_params, self.beta_params, param_dtype)
            self._kernel = _make_split_kernel(num_layers, q[0])
            self._out_width = 2 * q[-1]
            self._beta_offset = q[-1]
        else:
            self._operands, out_pad = _pack_blockdiag(self.gamma_params, self.beta_params,
                                                      param_dtype)
            self._kernel = _make_packed_kernel(num_layers)
            self._out_width = out_pad
            self._beta_offset = self.feature_dim

        # True per-branch FLOPs per batch row (no zero blocks, no padding counted).
        layer_dims = [self.conditioning_dim] + self.dims + [self.feature_dim]
        self._flops_per_row = 2 * sum(2 * layer_dims[i] * layer_dims[i + 1]
                                      for i in range(len(layer_dims) - 1))
        self._param_bytes = sum(int(p.size) * p.dtype.itemsize for p in self._operands)

    @staticmethod
    def _init_mlp(in_dim, dims, out_dim, key):
        """Matches nn.Linear's default U(-1/sqrt(fan_in), 1/sqrt(fan_in)); weights stored
        transposed as (in, out)."""
        layer_dims = [in_dim] + list(dims) + [out_dim]
        weights, biases = [], []
        for i in range(len(layer_dims) - 1):
            key, kw, kb = jax.random.split(key, 3)
            fan_in, fan_out = layer_dims[i], layer_dims[i + 1]
            bound = 1.0 / float(fan_in) ** 0.5
            weights.append(jax.random.uniform(kw, (fan_in, fan_out), jnp.float32,
                                              -bound, bound))
            biases.append(jax.random.uniform(kb, (1, fan_out), jnp.float32, -bound, bound))
        return weights, biases

    def forward_fused(self, z):
        """Single fused launch; returns the lane-dense (batch, out_width) slab with
        gamma = slab[:, :feature_dim] and beta = slab[:, beta_offset:beta_offset+feature_dim].
        Prefer this when the consumer can take the packed slab (avoids two extra HBM
        slice round-trips)."""
        batch = z.shape[0]
        bytes_accessed = (int(z.size) * z.dtype.itemsize + self._param_bytes
                          + batch * self._out_width * z.dtype.itemsize)
        cost = pl.CostEstimate(flops=int(batch * self._flops_per_row),
                               transcendentals=0,
                               bytes_accessed=int(bytes_accessed))
        return fused_film_forward(z, self._operands, self._kernel, self._out_width,
                                  cost_estimate=cost)

    def __call__(self, z):
        # TODO(synk): fuse the downstream FiLM application (x * gamma + beta) with this
        # kernel (or consume forward_fused()'s slab directly) to avoid materializing
        # gamma/beta through two extra XLA slices in the latency-bound small-batch case.
        out = self.forward_fused(z)
        f = self.feature_dim
        gamma = out[:, :f]
        beta = out[:, self._beta_offset:self._beta_offset + f]
        return gamma, beta


# ---------------------------------------------------------------------------
# Pure-JAX reference (uses the ORIGINAL unpacked parameters)
# ---------------------------------------------------------------------------
def _mlp_reference(z, weights, biases):
    h = z
    for i, (w, b) in enumerate(zip(weights, biases)):
        h = h @ w + b
        if i < len(weights) - 1:
            h = jnp.maximum(h, 0.0)
    return h


if __name__ == "__main__":
    key = jax.random.PRNGKey(0)
    k1, k2, kz1, kz2, kz3 = jax.random.split(key, 5)

    # --- Test 1: default small config -> block-diagonal packed path, no grid ---------
    batch, cond_dim, feature_dim, intermediate_dim = 8, 16, 64, 32
    mod = NonLinearFiLMGeneratorPallas(cond_dim, feature_dim, intermediate_dim, k1)
    z = jax.random.normal(kz1, (batch, cond_dim), jnp.float32)
    gamma, beta = mod(z)
    jax.block_until_ready((gamma, beta))
    g_ref = _mlp_reference(z, *mod.gamma_params)
    b_ref = _mlp_reference(z, *mod.beta_params)
    assert gamma.shape == (batch, feature_dim) and beta.shape == (batch, feature_dim)
    assert jnp.allclose(gamma, g_ref, atol=1e-4, rtol=1e-4)
    assert jnp.allclose(beta, b_ref, atol=1e-4, rtol=1e-4)

    # --- Test 2: larger batch -> batch-tiled parallel-grid path ----------------------
    z_big = jax.random.normal(kz2, (512, cond_dim), jnp.float32)
    gamma2, beta2 = mod(z_big)
    jax.block_until_ready((gamma2, beta2))
    assert jnp.allclose(gamma2, _mlp_reference(z_big, *mod.gamma_params), atol=1e-4, rtol=1e-4)
    assert jnp.allclose(beta2, _mlp_reference(z_big, *mod.beta_params), atol=1e-4, rtol=1e-4)

    # --- Test 3: wide-dim config -> split (no block-diagonal zeros) path -------------
    mod3 = NonLinearFiLMGeneratorPallas(16, 160, [192, 160], k2)
    z3 = jax.random.normal(kz3, (8, 16), jnp.float32)
    gamma3, beta3 = mod3(z3)
    jax.block_until_ready((gamma3, beta3))
    assert gamma3.shape == (8, 160) and beta3.shape == (8, 160)
    assert jnp.allclose(gamma3, _mlp_reference(z3, *mod3.gamma_params), atol=3e-4, rtol=3e-4)
    assert jnp.allclose(beta3, _mlp_reference(z3, *mod3.beta_params), atol=3e-4, rtol=3e-4)

    print("KERNEL_OK")
</pallas_src>

<mosaic_0001>
module attributes {stable_mosaic.version = 11 : i64} {
  func.func @kernel(%arg0: memref<8x16xf32, #tpu.memory_space<vmem>>, %arg1: memref<16x128xf32, #tpu.memory_space<vmem>>, %arg2: memref<1x128xf32, #tpu.memory_space<vmem>>, %arg3: memref<128x128xf32, #tpu.memory_space<vmem>>, %arg4: memref<1x128xf32, #tpu.memory_space<vmem>>, %arg5: memref<8x128xf32, #tpu.memory_space<vmem>>) attributes {dimension_semantics = [], scalar_prefetch = 0 : i64, scratch_operands = 0 : i64, tpu.core_type = #tpu.core_type<tc>} {
    %c0 = arith.constant 0 : index
    %c0_0 = arith.constant 0 : index
    %0 = vector.load %arg0[%c0, %c0_0] : memref<8x16xf32, #tpu.memory_space<vmem>>, vector<8x16xf32>
    %c0_1 = arith.constant 0 : index
    %c0_2 = arith.constant 0 : index
    %1 = vector.load %arg1[%c0_1, %c0_2] : memref<16x128xf32, #tpu.memory_space<vmem>>, vector<16x128xf32>
    %c0_3 = arith.constant 0 : index
    %c0_4 = arith.constant 0 : index
    %2 = vector.load %arg2[%c0_3, %c0_4] : memref<1x128xf32, #tpu.memory_space<vmem>>, vector<1x128xf32>
    %cst = arith.constant dense<0.000000e+00> : vector<8x128xf32>
    %3 = tpu.matmul %0, %1, %cst {dimension_numbers = #tpu.dot_dimension_numbers<[1], [0], [0], [1], [0, 0, 1, 1], [], []>} : vector<8x16xf32>, vector<16x128xf32>, vector<8x128xf32> -> vector<8x128xf32>
    %4 = vector.broadcast %2 : vector<1x128xf32> to vector<8x128xf32>
    %5 = arith.addf %3, %4 : vector<8x128xf32>
    %cst_5 = arith.constant 0.000000e+00 : f32
    %6 = vector.broadcast %cst_5 : f32 to vector<8x128xf32>
    %7 = arith.maximumf %5, %6 : vector<8x128xf32>
    %c0_6 = arith.constant 0 : index
    %c0_7 = arith.constant 0 : index
    %8 = vector.load %arg3[%c0_6, %c0_7] : memref<128x128xf32, #tpu.memory_space<vmem>>, vector<128x128xf32>
    %c0_8 = arith.constant 0 : index
    %c0_9 = arith.constant 0 : index
    %9 = vector.load %arg4[%c0_8, %c0_9] : memref<1x128xf32, #tpu.memory_space<vmem>>, vector<1x128xf32>
    %cst_10 = arith.constant dense<0.000000e+00> : vector<8x128xf32>
    %10 = tpu.matmul %7, %8, %cst_10 {dimension_numbers = #tpu.dot_dimension_numbers<[1], [0], [0], [1], [0, 0, 1, 1], [], []>} : vector<8x128xf32>, vector<128x128xf32>, vector<8x128xf32> -> vector<8x128xf32>
    %11 = vector.broadcast %9 : vector<1x128xf32> to vector<8x128xf32>
    %12 = arith.addf %10, %11 : vector<8x128xf32>
    %c0_11 = arith.constant 0 : index
    %c0_12 = arith.constant 0 : index
    %13 = vector.load %arg5[%c0_11, %c0_12] : memref<8x128xf32, #tpu.memory_space<vmem>>, vector<8x128xf32>
    tpu.vector_store %arg5[%c0_11, %c0_12], %12 {strides = array<i32>} : memref<8x128xf32, #tpu.memory_space<vmem>>, vector<8x128xf32>,
    return
  }
}

</mosaic_0001>

<bundles_post_ra>
// kernel: tpu_custom_call.1
= control target key start
LH: loop header
LB: loop body
LE: loop exit
PB: predicated region body
PF: predicated region fallthrough
CT: control target
= control target key end

     0   :  { %10 = vsyncpa [#allocation3], 0  ;;  %s549_s0 = inlined_call_operand.hbm [shape: f32[8,16], index: 0, kind: input, shape index: {}]   ;;  %s550_s1 = inlined_call_operand.hbm [shape: f32[16,128], index: 1, kind: input, shape index: {}]   ;;  %s551_s2 = inlined_call_operand.vmem [shape: f32[1,128], index: 2, kind: input, shape index: {}]   ;;  %s552_s3 = inlined_call_operand.hbm [shape: f32[128,128], index: 3, kind: input, shape index: {}]   ;;  %s553_s4 = inlined_call_operand.vmem [shape: f32[1,128], index: 4, kind: input, shape index: {}]   ;;  %s554_s5 = inlined_call_operand.hbm [shape: f32[8,128], index: 5, kind: output, shape index: {}]  }
   0x1   :  { %11 = vsyncpa [#allocation6], 0 }
   0x2   :  { %12 = vsyncpa [#allocation4], 0  ;;  %s450_s18 = smov [#allocation5]   ;;  %s356_s22 = scalar_lea.hbm %s550_s1, 256 }
   0x3   :  { %s28_s19 = sshll.u32 %s450_s18, 4  ;;  %p357_p0 = scmp.ne.s32.totalorder %s550_s1, %s356_s22  ;;  %s29_s19 = int_to_ptr.vmem [resolvable:$true] %s28_s19 }
   0x4   :  { %p360_p1 = scmp.lt.u32.totalorder %s356_s22, %s550_s1 }
   0x6   :  { %p362_p2 = pnand %p360_p1, %p357_p0 }
   0x8   :  { %365 = shalt.err (!%p362_p2)
}
   0x9   :  { %s366_s27 = scalar_lea.vmem %s29_s19, 256  ;;  %p371_p4 = scmp.lt.s32.totalorder %s29_s19, %s29_s19 }
   0xa   :  { %p367_p3 = scmp.ne.s32.totalorder %s29_s19, %s366_s27  ;;  %p372_p5 = scmp.lt.s32.totalorder %s366_s27, %s366_s27 }
   0xc   :  { %p373_p6 = por %p372_p5, %p371_p4 }
   0xe   :  { %p374_p7 = pnand %p373_p6, %p367_p3 }
  0x10   :  { %377 = shalt.err (!%p374_p7)
}
  0x11   :  { %s451_s28 = smov 128   ;;  %s452_s29 = smov 8  }
  0x12   :  { %34 = dma.hbm_to_vmem [thread:$0]  %s550_s1, 256, %s29_s19, [#allocation6], %s451_s28, %s451_s28, %s452_s29  }
  0x13   :  { %s453_s7 = smov [#allocation2]   ;;  %s454_s9 = smov [#allocation7]  }
  0x14   :  { %s19_s8 = sshll.u32 %s453_s7, 4  ;;  %s42_s10 = sshll.u32 %s454_s9, 4  ;;  %s20_s8 = int_to_ptr.vmem [resolvable:$true] %s19_s8  ;;  %s43_s10 = int_to_ptr.vmem [resolvable:$true] %s42_s10 }
  0x15   :  { %s378_s13 = scalar_lea.hbm %s549_s0, 128 }
  0x16   :  { %p379_p8 = scmp.ne.s32.totalorder %s549_s0, %s378_s13  ;;  %p382_p9 = scmp.lt.u32.totalorder %s378_s13, %s549_s0 }
  0x18   :  { %p384_p10 = pnand %p382_p9, %p379_p8 }
  0x1a   :  { %387 = shalt.err (!%p384_p10)
}
  0x1b   :  { %s388_s1 = scalar_lea.vmem %s20_s8, 128  ;;  %p393_p12 = scmp.lt.s32.totalorder %s20_s8, %s20_s8 }
  0x1c   :  { %p389_p11 = scmp.ne.s32.totalorder %s20_s8, %s388_s1  ;;  %p394_p13 = scmp.lt.s32.totalorder %s388_s1, %s388_s1 }
  0x1e   :  { %p395_p0 = por %p394_p13, %p393_p12 }
  0x20   :  { %p396_p1 = pnand %p395_p0, %p389_p11 }
  0x22   :  { %399 = shalt.err (!%p396_p1)
}
  0x23   :  { %22 = dma.hbm_to_vmem [thread:$0]  %s549_s0, 128, %s20_s8, [#allocation3]  }
  0x24   :  { %s400_s22 = scalar_lea.hbm %s552_s3, 2048 }
  0x25   :  { %p401_p2 = scmp.ne.s32.totalorder %s552_s3, %s400_s22  ;;  %p404_p3 = scmp.lt.u32.totalorder %s400_s22, %s552_s3 }
  0x27   :  { %p406_p4 = pnand %p404_p3, %p401_p2 }
  0x29   :  { %409 = shalt.err (!%p406_p4)
}
  0x2a   :  { %s410_s27 = scalar_lea.vmem %s43_s10, 2048  ;;  %p415_p6 = scmp.lt.s32.totalorder %s43_s10, %s43_s10 }
  0x2b   :  { %p411_p5 = scmp.ne.s32.totalorder %s43_s10, %s410_s27  ;;  %p416_p7 = scmp.lt.s32.totalorder %s410_s27, %s410_s27 }
  0x2d   :  { %p417_p8 = por %p416_p7, %p415_p6 }
  0x2f   :  { %p418_p9 = pnand %p417_p8, %p411_p5 }
  0x31   :  { %421 = shalt.err (!%p418_p9)
}
  0x32   :  { %48 = dma.hbm_to_vmem [thread:$0]  %s552_s3, 2048, %s43_s10, [#allocation6], %s451_s28, %s451_s28, %s452_s29  }
  0x33   :  { %444 = dma.done.wait [#allocation3], 128  }
  0x34   :  { %445 = vsyncadd [#allocation3], 4294967168 }
  0x35   :  { %446 = dma.done.wait [#allocation6], 2304  }
  0x36   :  { %447 = vsyncadd [#allocation6], 4294964992  ;;  %v455_v0 = vmov 0.0|0.0   ;;  %vm456_vm0 = vmmov 0   ;;  %v457_v1 = vmov 0.0   ;;  %v61_v2 = vld [vmem:[#allocation5] sm:$0xff] }
  0x37   :  { %320 = vmatprep.subr.bf16.mxu0 %v455_v0  ;;  %282 = vmatprep.mubr.msk.f32.mxu0 %vm456_vm0, %v457_v1  ;;  %v62_v3 = vld [vmem:[#allocation5 + $0x8] sm:$0xff]  ;;  %v145_v5 = vld [vmem:[#allocation7] sm:$0xff]  ;;  %v146_v6 = vld [vmem:[#allocation7 + $0x8] sm:$0xff]  ;;  %vm70_vm1 = vcmask 130048   ;;  %s458_s7 = smov [#allocation8]  }
  0x38   :  { %323 = vmatprep.subr.bf16.mxu1 %v455_v0  ;;  %317 = vmatprep.mubr.msk.f32.mxu1 %vm456_vm0, %v457_v1  ;;  %v321_v4 = vpack.c.bf16 %v62_v3, %v61_v2  ;;  %v147_v7 = vld [vmem:[#allocation7 + $0x10] sm:$0xff]  ;;  %v324_v8 = vpack.c.bf16 %v146_v6, %v145_v5  ;;  %v148_v9 = vld [vmem:[#allocation7 + $0x18] sm:$0xff]  ;;  %v60_v10 = vld [vmem:[#allocation2] sm:$0xff]  ;;  %s245_s8 = sshll.u32 %s458_s7, 4  ;;  %s246_s8 = int_to_ptr.vmem [resolvable:$true] %s245_s8 }
  0x39   :  { %v327_v11 = vpack.c.bf16 %v148_v9, %v147_v7  ;;  %v149_v12 = vld [vmem:[#allocation7 + $0x20] sm:$0xff]  ;;  %v150_v13 = vld [vmem:[#allocation7 + $0x28] sm:$0xff]  ;;  %v151_v15 = vld [vmem:[#allocation7 + $0x30] sm:$0xff]  ;;  %s422_s9 = scalar_lea.vmem %s246_s8, 128  ;;  %p427_p11 = scmp.lt.s32.totalorder %s246_s8, %s246_s8 }
  0x3a   :  { %322 = vmatpush3.bf16.msra.mxu0 %v321_v4  ;;  %325 = vmatpush3.bf16.msra.mxu1 %v324_v8  ;;  %v330_v14 = vpack.c.bf16 %v150_v13, %v149_v12  ;;  %v152_v16 = vld [vmem:[#allocation7 + $0x38] sm:$0xff]  ;;  %v153_v18 = vld [vmem:[#allocation7 + $0x40] sm:$0xff]  ;;  %v154_v19 = vld [vmem:[#allocation7 + $0x48] sm:$0xff]  ;;  %p423_p10 = scmp.ne.s32.totalorder %s246_s8, %s422_s9  ;;  %p428_p12 = scmp.lt.s32.totalorder %s422_s9, %s422_s9 }
  0x3b   :  { %326 = vmatprep.subr.bf16.mxu1 %v455_v0  ;;  %v333_v17 = vpack.c.bf16 %v152_v16, %v151_v15  ;;  %v336_v20 = vpack.c.bf16 %v154_v19, %v153_v18  ;;  %v155_v21 = vld [vmem:[#allocation7 + $0x50] sm:$0xff]  ;;  %v156_v22 = vld [vmem:[#allocation7 + $0x58] sm:$0xff]  ;;  %v157_v24 = vld [vmem:[#allocation7 + $0x60] sm:$0xff] }
  0x3c   :  { %v339_v23 = vpack.c.bf16 %v156_v22, %v155_v21  ;;  %v158_v25 = vld [vmem:[#allocation7 + $0x68] sm:$0xff]  ;;  %v159_v27 = vld [vmem:[#allocation7 + $0x70] sm:$0xff]  ;;  %v160_v28 = vld [vmem:[#allocation7 + $0x78] sm:$0xff]  ;;  %p429_p13 = por %p428_p12, %p427_p11 }
  0x3d   :  { %283 = vmatmul.mubr.msk.f32.vlgmr.msra.gmra.mrb[0].mxu0 %vm70_vm1, %v60_v10  ;;  %v342_v26 = vpack.c.bf16 %v158_v25, %v157_v24  ;;  %v345_v29 = vpack.c.bf16 %v160_v28, %v159_v27  ;;  %v255_v30 = vld [vmem:[%s551_s2] ss:$0 sm:$0xff] }
  0x3e   :  { %328 = vmatpush3.bf16.msra.mxu1 %v327_v11  ;;  %v257_v35 = vld [vmem:[%s553_s4] ss:$0 sm:$0xff]  ;;  %p430_p0 = pnand %p429_p13, %p423_p10 }
  0x3f   :  { %329 = vmatprep.subr.bf16.mxu1 %v455_v0 }
  0x42   :  { %331 = vmatpush3.bf16.msra.mxu1 %v330_v14 }
  0x43   :  { %332 = vmatprep.subr.bf16.mxu1 %v455_v0 }
  0x46   :  { %334 = vmatpush3.bf16.msra.mxu1 %v333_v17 }
  0x47   :  { %335 = vmatprep.subr.bf16.mxu1 %v455_v0 }
  0x4a   :  { %337 = vmatpush3.bf16.msra.mxu1 %v336_v20 }
  0x4b   :  { %338 = vmatprep.subr.bf16.mxu1 %v455_v0 }
  0x4e   :  { %340 = vmatpush3.bf16.msra.mxu1 %v339_v23 }
  0x4f   :  { %341 = vmatprep.subr.bf16.mxu1 %v455_v0 }
  0x52   :  { %343 = vmatpush3.bf16.msra.mxu1 %v342_v26 }
  0x53   :  { %344 = vmatprep.subr.bf16.mxu1 %v455_v0 }
  0x56   :  { %346 = vmatpush3.bf16.msra.mxu1 %v345_v29 }
 0x110   :  { %v140_v31 = vpop.f32.mrb[0].mxu0 }
 0x111   :  { %v141_v32 = vadd.f32 %v255_v30, %v140_v31  ;;  %v284_v33 = vpop.f32.mrb[1].mxu0 }
 0x113   :  { %v144_v34 = vmax.f32 %v141_v32, 0.0 }
 0x115   :  { %318 = vmatmul.mubr.f32.vlgmr.msra.gmra.mrb[0].mxu1 %v144_v34 }
 0x1e8   :  { %v234_v36 = vpop.f32.mrb[0].mxu1 }
 0x1e9   :  { %v235_v37 = vadd.f32 %v257_v35, %v234_v36  ;;  %v319_v38 = vpop.f32.mrb[1].mxu1 }
 0x1eb   :  { %238 = vst [vmem:[#allocation8] sm:$0xff] %v235_v37 }
 0x1ec   :  { %433 = shalt.err (!%p430_p0)
}
 0x1ed   :  { %s434_s11 = scalar_lea.hbm %s554_s5, 128 }
 0x1ee   :  { %p435_p1 = scmp.ne.s32.totalorder %s554_s5, %s434_s11  ;;  %p438_p2 = scmp.lt.u32.totalorder %s434_s11, %s554_s5 }
 0x1f0   :  { %p440_p3 = pnand %p438_p2, %p435_p1 }
 0x1f2   :  { %443 = shalt.err (!%p440_p3)
}
 0x1f3   :  { %248 = dma.vmem_to_hbm [thread:$0]  %s246_s8, 128, %s554_s5, [#allocation4]  }
 0x1f4   :  { %448 = dma.done.wait [#allocation4], 128  }
 0x1f5   :  { %449 = vsyncadd [#allocation4], 4294967168 }
 0x1f6   :  { %252 = vsyncpa [#allocation3], 1 }
 0x1f7   :  { %253 = vsyncpa [#allocation6], 1 }
 0x1f8   :  { %254 = vsyncpa [#allocation4], 1 }

</bundles_post_ra>
